<compile_context>
chip_gen: v7x
topology: tpu7x:2x2x1
jax: 0.10.0
libtpu: 0.0.40
codegen_flags: <defaults>
</compile_context>

<pallas_src>
import math

import jax
import jax.numpy as jnp
from jax.experimental import pallas as pl
from jax.experimental.pallas import tpu as pltpu

_LOG_SQRT_2PI = math.log(math.sqrt(2.0 * math.pi))


# --------------------------------------------------------------------------- #
# Kernel
# --------------------------------------------------------------------------- #
def _gmm_kernel(x_ref, params_ref, out_ref):
    # x_ref:      (TB, TD)      batch tile (lane-dense last dim)
    # params_ref: (C, 3, TD)    per component: [mean, 1/(2 std^2), bias]
    #                           bias = -log(std) - log(sqrt(2pi)) + nan_to_num(log w)
    # out_ref:    (TB, TD)
    x = x_ref[...]
    n_components = params_ref.shape[0]

    # Pass 1: compute each log-prob exactly once (cached), running max.
    lps = []
    m = None
    for c in range(n_components):
        prow = params_ref[c]            # (3, TD), loaded once per component
        mean = prow[0:1, :]             # (1, TD) -> sublane-broadcast against x
        inv = prow[1:2, :]
        bias = prow[2:3, :]
        diff = x - mean
        lp = bias - (diff * diff) * inv
        lps.append(lp)
        m = lp if m is None else jnp.maximum(m, lp)

    # Guard the all -inf case so exp() never sees NaN (torch returns -inf there).
    m_safe = jnp.where(m == -jnp.inf, 0.0, m)

    # Pass 2: exactly one EUP exp per component, no recompute of lp.
    s = jnp.exp(lps[0] - m_safe)
    for c in range(1, n_components):
        s = s + jnp.exp(lps[c] - m_safe)

    out_ref[...] = jnp.where(m == -jnp.inf, m, m_safe + jnp.log(s))


# --------------------------------------------------------------------------- #
# Generation-aware tiling helpers
# --------------------------------------------------------------------------- #
def _chip_info():
    """Return (vmem_budget_bytes, num_tensorcores) with conservative fallbacks."""
    budget = 48 * 1024 * 1024   # safe on every generation (v7x has 64 MiB / TC)
    num_tc = 1
    try:
        kind = jax.devices()[0].device_kind.lower()
        if "v7" in kind:
            budget, num_tc = 48 * 1024 * 1024, 2          # 64 MiB physical / TC
        elif ("v4" in kind) or ("v5p" in kind):
            budget, num_tc = 64 * 1024 * 1024, 2          # megacore chips
        else:
            budget, num_tc = 64 * 1024 * 1024, 1          # v5e / v6e: 128 MiB, 1 TC
    except Exception:
        pass
    try:  # refine with the real VMEM capacity when the API is available
        info = pltpu.get_tpu_info()
        phys = getattr(info, "vmem_capacity_bytes", None)
        if phys:
            budget = min(budget, int(phys * 0.75))
    except Exception:
        pass
    return budget, num_tc


def _choose_tiles(Bf, Df, C, vmem_budget, num_tc):
    """Pick (batch_tile, lane_tile) so (C + ~7) live tile copies fit VMEM."""
    usable = int(vmem_budget * 0.85)

    def tb_for(td):
        # 2x double-buffered x + out (4), plus ~(C + 3) live f32 temporaries
        # (cached lps, m, s, ...), plus the double-buffered stacked params.
        param_bytes = 2 * 3 * C * td * 4
        per_row = (C + 7) * td * 4
        avail = usable - param_bytes
        return 0 if avail <= 0 else avail // per_row

    # Lane (Df) tile: full row unless even an 8-row tile would not fit.
    TD = Df
    if tb_for(TD) < 8 and Df % 128 == 0:
        cands = [d for d in range(128, Df, 128) if Df % d == 0]
        TD = 128 if cands else Df
        for d in reversed(cands):
            if tb_for(d) >= 8:
                TD = d
                break

    # Batch tile: largest multiple of 8 that fits (padding handles remainders).
    Bf8 = ((Bf + 7) // 8) * 8
    TB = max(8, min((tb_for(TD) // 8) * 8, Bf8))

    # Only shrink for grid parallelism on chips that actually have 2 TensorCores.
    if num_tc >= 2:
        def steps(tb):
            return -(-Bf // tb) * max(1, Df // TD)
        while TB > 8 and steps(TB) < 4:
            TB = max(8, ((TB // 2) // 8) * 8)
    return int(TB), int(TD)


# --------------------------------------------------------------------------- #
# Wrapper
# --------------------------------------------------------------------------- #
def _prepare_params(means, stds, weights):
    """Hoist all parameter-only math; returns stacked (C, 3, n_dim) params."""
    means_t = jnp.asarray(means, jnp.float32).T       # (C, D)
    stds_t = jnp.asarray(stds, jnp.float32).T
    weights_t = jnp.asarray(weights, jnp.float32).T

    inv_two_var = 1.0 / (2.0 * stds_t * stds_t)
    log_w = jnp.log(weights_t)
    finfo = jnp.finfo(jnp.float32)
    # torch.nan_to_num defaults: nan -> 0, +inf -> finfo.max, -inf -> finfo.min.
    log_w = jnp.where(jnp.isnan(log_w), 0.0, log_w)
    log_w = jnp.where(log_w == jnp.inf, finfo.max, log_w)
    log_w = jnp.where(log_w == -jnp.inf, finfo.min, log_w)
    bias = -jnp.log(stds_t) - _LOG_SQRT_2PI + log_w

    return jnp.stack([means_t, inv_two_var, bias], axis=1)   # (C, 3, D)


def _gmm_forward(x, params_base):
    x = jnp.asarray(x, jnp.float32)
    B, n_dim = x.shape
    C = params_base.shape[0]

    vmem_budget, num_tc = _chip_info()

    # Lane densification: fold k batch rows into lanes so the last dim is a
    # multiple of 128 (dense, unmasked stores). Pad B when needed instead of
    # giving up, unless padding would more than ~double the work.
    k = 1
    if n_dim % 128 != 0:
        k_target = math.lcm(n_dim, 128) // n_dim
        if (-B) % k_target <= max(B, 8):
            k = k_target
    B_pk = B + ((-B) % k)
    if B_pk != B:
        x = jnp.pad(x, ((0, B_pk - B), (0, 0)))
    Bf, Df = B_pk // k, n_dim * k
    x_f = x.reshape(Bf, Df)
    params = params_base if k == 1 else jnp.tile(params_base, (1, 1, k))

    # Tiling + batch padding to a tile multiple (arbitrary batch sizes OK).
    TB, TD = _choose_tiles(Bf, Df, C, vmem_budget, num_tc)
    Bf_pad = Bf + ((-Bf) % TB)
    if Bf_pad != Bf:
        x_f = jnp.pad(x_f, ((0, Bf_pad - Bf), (0, 0)))

    grid = (Bf_pad // TB, Df // TD)

    out_f = pl.pallas_call(
        _gmm_kernel,
        out_shape=jax.ShapeDtypeStruct((Bf_pad, Df), jnp.float32),
        grid_spec=pltpu.PrefetchScalarGridSpec(
            num_scalar_prefetch=0,
            grid=grid,
            in_specs=[
                pl.BlockSpec((TB, TD), lambda i, j: (i, j)),
                pl.BlockSpec((C, 3, TD), lambda i, j: (0, 0, j)),
            ],
            out_specs=pl.BlockSpec((TB, TD), lambda i, j: (i, j)),
        ),
        compiler_params=pltpu.CompilerParams(
            dimension_semantics=("parallel", "parallel"),
            vmem_limit_bytes=int(vmem_budget)),
    )(x_f, params)

    return out_f[:Bf].reshape(B_pk, n_dim)[:B]


def make_parallel_gmm(means, stds, weights):
    """Factory: prepare parameters once, return a jitted forward(x)."""
    params = _prepare_params(means, stds, weights)
    return jax.jit(lambda x: _gmm_forward(x, params))


def parallel_gmm_forward(x, means, stds, weights):
    """Convenience one-shot form (prep not cached)."""
    return _gmm_forward(jnp.asarray(x, jnp.float32),
                        _prepare_params(means, stds, weights))


# --------------------------------------------------------------------------- #
# Pure-JAX reference (mirrors the PyTorch code, incl. nan_to_num defaults)
# --------------------------------------------------------------------------- #
def _reference_forward(x, means, stds, weights):
    xe = x[:, :, None]
    var = stds ** 2
    lp = (-(xe - means[None]) ** 2 / (2.0 * var[None])
          - jnp.log(stds)[None] - _LOG_SQRT_2PI)
    lw = jnp.log(weights)
    finfo = jnp.finfo(jnp.float32)
    lw = jnp.where(jnp.isnan(lw), 0.0, lw)
    lw = jnp.where(lw == jnp.inf, finfo.max, lw)
    lw = jnp.where(lw == -jnp.inf, finfo.min, lw)
    return jax.scipy.special.logsumexp(lp + lw[None], axis=2)


if __name__ == "__main__":
    key = jax.random.PRNGKey(0)
    k1, k2, k3, k4, k5, k6, k7 = jax.random.split(key, 7)

    # Case 1: init mirrors ParallelGMM.__init__ (randn means, unit stds,
    # uniform weights); lane-fold path + cached/jitted parameter prep.
    B, D, C = 8, 32, 4
    means = jax.random.normal(k1, (D, C), dtype=jnp.float32)
    stds = jnp.ones((D, C), jnp.float32)
    weights = jnp.ones((D, C), jnp.float32) / C
    x = jax.random.normal(k2, (B, D), dtype=jnp.float32)
    fwd = make_parallel_gmm(means, stds, weights)
    out = jax.block_until_ready(fwd(x))
    ref = _reference_forward(x, means, stds, weights)
    assert out.shape == (B, D)
    assert jnp.allclose(out, ref, atol=1e-5, rtol=1e-5), "case 1 mismatch"

    # Case 2: non-power-of-two n_dim + a zero mixture weight (nan_to_num path).
    B2, D2, C2 = 64, 48, 3
    means2 = jax.random.normal(k3, (D2, C2), dtype=jnp.float32)
    stds2 = 0.5 + jax.random.uniform(k4, (D2, C2), dtype=jnp.float32)
    weights2 = (jnp.ones((D2, C2), jnp.float32) / C2).at[0, 0].set(0.0)
    x2 = jax.random.normal(k5, (B2, D2), dtype=jnp.float32)
    out2 = jax.block_until_ready(parallel_gmm_forward(x2, means2, stds2, weights2))
    ref2 = _reference_forward(x2, means2, stds2, weights2)
    assert jnp.allclose(out2, ref2, atol=1e-5, rtol=1e-5), "case 2 mismatch"

    # Case 3: batch not divisible by fold factor / tile -> exercises padding.
    B3, D3, C3 = 10, 48, 3
    means3 = jax.random.normal(k6, (D3, C3), dtype=jnp.float32)
    stds3 = jnp.ones((D3, C3), jnp.float32)
    weights3 = jnp.ones((D3, C3), jnp.float32) / C3
    x3 = jax.random.normal(k7, (B3, D3), dtype=jnp.float32)
    out3 = jax.block_until_ready(parallel_gmm_forward(x3, means3, stds3, weights3))
    ref3 = _reference_forward(x3, means3, stds3, weights3)
    assert out3.shape == (B3, D3)
    assert jnp.allclose(out3, ref3, atol=1e-5, rtol=1e-5), "case 3 mismatch"

    print("KERNEL_OK")
</pallas_src>

<mosaic_0001>
module attributes {stable_mosaic.version = 11 : i64} {
  func.func @_gmm_kernel(%arg0: i32, %arg1: i32, %arg2: memref<8x128xf32, #tpu.memory_space<vmem>>, %arg3: memref<4x3x128xf32, #tpu.memory_space<vmem>>, %arg4: memref<8x128xf32, #tpu.memory_space<vmem>>) attributes {dimension_semantics = [#tpu.dimension_semantics<parallel>, #tpu.dimension_semantics<parallel>], iteration_bounds = array<i64: 1, 1>, scalar_prefetch = 0 : i64, scratch_operands = 0 : i64, tpu.core_type = #tpu.core_type<tc>, window_params = [{transform_indices = @transform_0, window_bounds = array<i64: 8, 128>}, {transform_indices = @transform_1, window_bounds = array<i64: 4, 3, 128>}, {transform_indices = @transform_2, window_bounds = array<i64: 8, 128>}]} {
    %c0 = arith.constant 0 : index
    %c0_0 = arith.constant 0 : index
    %0 = vector.load %arg2[%c0, %c0_0] : memref<8x128xf32, #tpu.memory_space<vmem>>, vector<8x128xf32>
    %c0_1 = arith.constant 0 : index
    %c0_2 = arith.constant 0 : index
    %c0_3 = arith.constant 0 : index
    %1 = vector.load %arg3[%c0_1, %c0_2, %c0_3] : memref<4x3x128xf32, #tpu.memory_space<vmem>>, vector<1x3x128xf32>
    %2 = vector.shape_cast %1 : vector<1x3x128xf32> to vector<3x128xf32>
    %3 = vector.extract_strided_slice %2 {offsets = [0, 0], sizes = [1, 128], strides = [1, 1]} : vector<3x128xf32> to vector<1x128xf32>
    %4 = vector.extract_strided_slice %2 {offsets = [1, 0], sizes = [1, 128], strides = [1, 1]} : vector<3x128xf32> to vector<1x128xf32>
    %5 = vector.extract_strided_slice %2 {offsets = [2, 0], sizes = [1, 128], strides = [1, 1]} : vector<3x128xf32> to vector<1x128xf32>
    %6 = vector.broadcast %3 : vector<1x128xf32> to vector<8x128xf32>
    %7 = arith.subf %0, %6 : vector<8x128xf32>
    %8 = arith.mulf %7, %7 : vector<8x128xf32>
    %9 = vector.broadcast %4 : vector<1x128xf32> to vector<8x128xf32>
    %10 = arith.mulf %8, %9 : vector<8x128xf32>
    %11 = vector.broadcast %5 : vector<1x128xf32> to vector<8x128xf32>
    %12 = arith.subf %11, %10 : vector<8x128xf32>
    %c1 = arith.constant 1 : index
    %c0_4 = arith.constant 0 : index
    %c0_5 = arith.constant 0 : index
    %13 = vector.load %arg3[%c1, %c0_4, %c0_5] : memref<4x3x128xf32, #tpu.memory_space<vmem>>, vector<1x3x128xf32>
    %14 = vector.shape_cast %13 : vector<1x3x128xf32> to vector<3x128xf32>
    %15 = vector.extract_strided_slice %14 {offsets = [0, 0], sizes = [1, 128], strides = [1, 1]} : vector<3x128xf32> to vector<1x128xf32>
    %16 = vector.extract_strided_slice %14 {offsets = [1, 0], sizes = [1, 128], strides = [1, 1]} : vector<3x128xf32> to vector<1x128xf32>
    %17 = vector.extract_strided_slice %14 {offsets = [2, 0], sizes = [1, 128], strides = [1, 1]} : vector<3x128xf32> to vector<1x128xf32>
    %18 = vector.broadcast %15 : vector<1x128xf32> to vector<8x128xf32>
    %19 = arith.subf %0, %18 : vector<8x128xf32>
    %20 = arith.mulf %19, %19 : vector<8x128xf32>
    %21 = vector.broadcast %16 : vector<1x128xf32> to vector<8x128xf32>
    %22 = arith.mulf %20, %21 : vector<8x128xf32>
    %23 = vector.broadcast %17 : vector<1x128xf32> to vector<8x128xf32>
    %24 = arith.subf %23, %22 : vector<8x128xf32>
    %25 = arith.maximumf %12, %24 : vector<8x128xf32>
    %c2 = arith.constant 2 : index
    %c0_6 = arith.constant 0 : index
    %c0_7 = arith.constant 0 : index
    %26 = vector.load %arg3[%c2, %c0_6, %c0_7] : memref<4x3x128xf32, #tpu.memory_space<vmem>>, vector<1x3x128xf32>
    %27 = vector.shape_cast %26 : vector<1x3x128xf32> to vector<3x128xf32>
    %28 = vector.extract_strided_slice %27 {offsets = [0, 0], sizes = [1, 128], strides = [1, 1]} : vector<3x128xf32> to vector<1x128xf32>
    %29 = vector.extract_strided_slice %27 {offsets = [1, 0], sizes = [1, 128], strides = [1, 1]} : vector<3x128xf32> to vector<1x128xf32>
    %30 = vector.extract_strided_slice %27 {offsets = [2, 0], sizes = [1, 128], strides = [1, 1]} : vector<3x128xf32> to vector<1x128xf32>
    %31 = vector.broadcast %28 : vector<1x128xf32> to vector<8x128xf32>
    %32 = arith.subf %0, %31 : vector<8x128xf32>
    %33 = arith.mulf %32, %32 : vector<8x128xf32>
    %34 = vector.broadcast %29 : vector<1x128xf32> to vector<8x128xf32>
    %35 = arith.mulf %33, %34 : vector<8x128xf32>
    %36 = vector.broadcast %30 : vector<1x128xf32> to vector<8x128xf32>
    %37 = arith.subf %36, %35 : vector<8x128xf32>
    %38 = arith.maximumf %25, %37 : vector<8x128xf32>
    %c3 = arith.constant 3 : index
    %c0_8 = arith.constant 0 : index
    %c0_9 = arith.constant 0 : index
    %39 = vector.load %arg3[%c3, %c0_8, %c0_9] : memref<4x3x128xf32, #tpu.memory_space<vmem>>, vector<1x3x128xf32>
    %40 = vector.shape_cast %39 : vector<1x3x128xf32> to vector<3x128xf32>
    %41 = vector.extract_strided_slice %40 {offsets = [0, 0], sizes = [1, 128], strides = [1, 1]} : vector<3x128xf32> to vector<1x128xf32>
    %42 = vector.extract_strided_slice %40 {offsets = [1, 0], sizes = [1, 128], strides = [1, 1]} : vector<3x128xf32> to vector<1x128xf32>
    %43 = vector.extract_strided_slice %40 {offsets = [2, 0], sizes = [1, 128], strides = [1, 1]} : vector<3x128xf32> to vector<1x128xf32>
    %44 = vector.broadcast %41 : vector<1x128xf32> to vector<8x128xf32>
    %45 = arith.subf %0, %44 : vector<8x128xf32>
    %46 = arith.mulf %45, %45 : vector<8x128xf32>
    %47 = vector.broadcast %42 : vector<1x128xf32> to vector<8x128xf32>
    %48 = arith.mulf %46, %47 : vector<8x128xf32>
    %49 = vector.broadcast %43 : vector<1x128xf32> to vector<8x128xf32>
    %50 = arith.subf %49, %48 : vector<8x128xf32>
    %51 = arith.maximumf %38, %50 : vector<8x128xf32>
    %cst = arith.constant 0xFF800000 : f32
    %52 = vector.broadcast %cst : f32 to vector<8x128xf32>
    %53 = arith.cmpf oeq, %51, %52 : vector<8x128xf32>
    %cst_10 = arith.constant 0.000000e+00 : f32
    %54 = vector.broadcast %cst_10 : f32 to vector<8x128xf32>
    %55 = arith.select %53, %54, %51 : vector<8x128xi1>, vector<8x128xf32>
    %56 = arith.subf %12, %55 : vector<8x128xf32>
    %57 = math.exp %56 : vector<8x128xf32>
    %58 = arith.subf %24, %55 : vector<8x128xf32>
    %59 = math.exp %58 : vector<8x128xf32>
    %60 = arith.addf %57, %59 : vector<8x128xf32>
    %61 = arith.subf %37, %55 : vector<8x128xf32>
    %62 = math.exp %61 : vector<8x128xf32>
    %63 = arith.addf %60, %62 : vector<8x128xf32>
    %64 = arith.subf %50, %55 : vector<8x128xf32>
    %65 = math.exp %64 : vector<8x128xf32>
    %66 = arith.addf %63, %65 : vector<8x128xf32>
    %cst_11 = arith.constant 0xFF800000 : f32
    %67 = vector.broadcast %cst_11 : f32 to vector<8x128xf32>
    %68 = arith.cmpf oeq, %51, %67 : vector<8x128xf32>
    %69 = math.log %66 : vector<8x128xf32>
    %70 = arith.addf %55, %69 : vector<8x128xf32>
    %71 = arith.select %68, %51, %70 : vector<8x128xi1>, vector<8x128xf32>
    %c0_12 = arith.constant 0 : index
    %c0_13 = arith.constant 0 : index
    %72 = vector.load %arg4[%c0_12, %c0_13] : memref<8x128xf32, #tpu.memory_space<vmem>>, vector<8x128xf32>
    tpu.vector_store %arg4[%c0_12, %c0_13], %71 {strides = array<i32>} : memref<8x128xf32, #tpu.memory_space<vmem>>, vector<8x128xf32>,
    return
  }
  func.func @transform_0(%arg0: i32, %arg1: i32) -> (i32, i32) {
    %c0_i32 = arith.constant 0 : i32
    return %arg0, %arg1 : i32, i32
  }
  func.func @transform_1(%arg0: i32, %arg1: i32) -> (i32, i32, i32) {
    %c0_i32 = arith.constant 0 : i32
    %c0_i32_0 = arith.constant 0 : i32
    %c0_i32_1 = arith.constant 0 : i32
    return %c0_i32, %c0_i32_0, %arg1 : i32, i32, i32
  }
  func.func @transform_2(%arg0: i32, %arg1: i32) -> (i32, i32) {
    %c0_i32 = arith.constant 0 : i32
    return %arg0, %arg1 : i32, i32
  }
}

</mosaic_0001>

<bundles_post_ra>
// kernel: tile.7
= control target key start
LH: loop header
LB: loop body
LE: loop exit
PB: predicated region body
PF: predicated region fallthrough
CT: control target
= control target key end

     0   :  { %vm62_vm0 = vcmask 1047556   ;;  %s175_s30 = smov 96   ;;  %vm64_vm1 = vcmask 261120   ;;  %s176_s2 = smov 32   ;;  %vm81_vm2 = vcmask 1048320   ;;  %vm100_vm3 = vcmask 785920   ;;  %s239_s0 = inlined_call_operand.vmem [shape: f32[4,3,4,32], index: 0, kind: input, shape index: {}]   ;;  %s240_s1 = inlined_call_operand.vmem [shape: f32[4,3,128], index: 1, kind: output, shape index: {}]  }
   0x1   :  { %v158_v0 = vld [vmem:[%s239_s0 + $0x2c] sm:$0xf]  ;;  %v159_v1 = vld [vmem:[%s239_s0 + $0x28] sm:$0xf]  ;;  %v160_v2 = vld [vmem:[%s239_s0 + $0x24] sm:$0xf] }
   0x2   :  { %8 = vst [vmem:[#allocation1 + $0x58] sm:$0xf] %v158_v0  ;;  %13 = vst [vmem:[#allocation1 + $0x50] sm:$0xf] %v159_v1  ;;  %v161_v3 = vld [vmem:[%s239_s0 + $0x20] sm:$0xf] }
   0x3   :  { %18 = vst [vmem:[#allocation1 + $0x48] sm:$0xf] %v160_v2  ;;  %v162_v4 = vld [vmem:[%s239_s0 + $0x1c] sm:$0xf]  ;;  %23 = vst [vmem:[#allocation1 + $0x40] sm:$0xf] %v161_v3 }
   0x4   :  { %28 = vst [vmem:[#allocation1 + $0x38] sm:$0xf] %v162_v4  ;;  %v163_v5 = vld [vmem:[%s239_s0 + $0x18] sm:$0xf]  ;;  %v164_v6 = vld [vmem:[%s239_s0 + $0x14] sm:$0xf] }
   0x5   :  { %v165_v7 = vld [vmem:[%s239_s0 + $0x10] sm:$0xf]  ;;  %33 = vst [vmem:[#allocation1 + $0x30] sm:$0xf] %v163_v5  ;;  %38 = vst [vmem:[#allocation1 + $0x28] sm:$0xf] %v164_v6 }
   0x6   :  { %43 = vst [vmem:[#allocation1 + $0x20] sm:$0xf] %v165_v7  ;;  %v166_v8 = vld [vmem:[%s239_s0 + $0xc] sm:$0xf]  ;;  %v167_v9 = vld [vmem:[%s239_s0 + $0x8] sm:$0xf] }
   0x7   :  { %v168_v10 = vld [vmem:[%s239_s0 + $0x4] sm:$0xf]  ;;  %48 = vst [vmem:[#allocation1 + $0x18] sm:$0xf] %v166_v8  ;;  %53 = vst [vmem:[#allocation1 + $0x10] sm:$0xf] %v167_v9 }
   0x8   :  { %57 = vst [vmem:[#allocation1 + $0x8] sm:$0xf] %v168_v10  ;;  %v58_v11 = vld [vmem:[%s239_s0] sm:$0xf]  ;;  %s174_s0 = smov 64   ;;  %vm119_vm4 = vcmask 523520  }
   0x9   :  { %59 = vst [vmem:[#allocation1] sm:$0xf] %v58_v11 }
   0xa   :  { %v105_v12 = vld [vmem:[#allocation1 + $0x42] ss:$8 sm:$0xf]   ;;  %v86_v13 = vld [vmem:[#allocation1 + $0x43] ss:$8 sm:$0xf]  }
   0xb   :  { %106 = vrot.lane.b32.xlu1 %v105_v12, %s174_s0  ;;  %87 = vrot.lane.b32.xlu0 %v86_v13, %s175_s30  ;;  %v69_v22 = vld [vmem:[#allocation1 + $0x40] ss:$8 sm:$0xf]   ;;  %v124_v25 = vld [vmem:[#allocation1 + $0x41] ss:$8 sm:$0xf]  }
   0xc   :  { %72 = vst.msk [vmem:[#allocation0 + $0x10] sm:$0xf] %vm64_vm1, %v69_v22  }
   0xd   :  { %v95_v14 = vld [vmem:[#allocation1 + $0x2] ss:$8 sm:$0xf0]   ;;  %v76_v15 = vld [vmem:[#allocation1 + $0x3] ss:$8 sm:$0xf0]  }
   0xe   :  { %v114_v16 = vld [vmem:[#allocation1 + $0x1] ss:$8 sm:$0xf0]   ;;  %v61_v24 = vld [vmem:[#allocation1] ss:$8 sm:$0xf0]  }
  0x10   :  { %v93_v17 = vld [vmem:[#allocation1 + $0x2] ss:$8 sm:$0xf]   ;;  %v74_v18 = vld [vmem:[#allocation1 + $0x3] ss:$8 sm:$0xf]  }
  0x11   :  { %v97_v19 = vsel %vm62_vm0, %v95_v14, %v93_v17  ;;  %v78_v20 = vsel %vm62_vm0, %v76_v15, %v74_v18  ;;  %v112_v21 = vld [vmem:[#allocation1 + $0x1] ss:$8 sm:$0xf]   ;;  %v60_v23 = vld [vmem:[#allocation1] ss:$8 sm:$0xf]  }
  0x12   :  { %98 = vrot.lane.b32.xlu1 %v97_v19, %s174_s0  ;;  %79 = vrot.lane.b32.xlu0 %v78_v20, %s175_s30  ;;  %v116_v26 = vsel %vm62_vm0, %v114_v16, %v112_v21  ;;  %v63_v27 = vsel %vm62_vm0, %v61_v24, %v60_v23 }
  0x13   :  { %65 = vst.msk [vmem:[#allocation0] sm:$0xf] %vm64_vm1, %v63_v27   ;;  %67 = vst.msk [vmem:[#allocation0 + $0x4] sm:$0xf0] %vm64_vm1, %v63_v27  }
  0x16   :  { %125 = vrot.lane.b32.xlu1 %v124_v25, %s176_s2  ;;  %117 = vrot.lane.b32.xlu0 %v116_v26, %s176_s2 }
  0x7d   :  { %v107_v28 = vpop.permute.xlu1 %106   ;;  %v88_v29 = vpop.permute.xlu0 %87  }
  0x7e   :  { %91 = vst.msk [vmem:[#allocation0 + $0x10] sm:$0xf] %vm81_vm2, %v88_v29  }
  0x7f   :  { %110 = vst.msk [vmem:[#allocation0 + $0x10] sm:$0xf] %vm100_vm3, %v107_v28  }
  0x84   :  { %v99_v30 = vpop.permute.xlu1 %98   ;;  %v80_v31 = vpop.permute.xlu0 %79  }
  0x85   :  { %82 = vst.msk [vmem:[#allocation0] sm:$0xf] %vm81_vm2, %v80_v31   ;;  %84 = vst.msk [vmem:[#allocation0 + $0x4] sm:$0xf0] %vm81_vm2, %v80_v31  }
  0x86   :  { %101 = vst.msk [vmem:[#allocation0] sm:$0xf] %vm100_vm3, %v99_v30   ;;  %103 = vst.msk [vmem:[#allocation0 + $0x4] sm:$0xf0] %vm100_vm3, %v99_v30  }
  0x88   :  { %v126_v32 = vpop.permute.xlu1 %125   ;;  %v118_v33 = vpop.permute.xlu0 %117  }
  0x89   :  { %129 = vst.msk [vmem:[#allocation0 + $0x10] sm:$0xf] %vm119_vm4, %v126_v32   ;;  %120 = vst.msk [vmem:[#allocation0] sm:$0xf] %vm119_vm4, %v118_v33  }
  0x8a   :  { %122 = vst.msk [vmem:[#allocation0 + $0x4] sm:$0xf0] %vm119_vm4, %v118_v33  }
  0x90   :  { %v142_v34 = vld [vmem:[#allocation0 + $0x10] sm:$0xf]  ;;  %v133_v35 = vld [vmem:[#allocation0] sm:$0xf] }
  0x91   :  { %v137_v36 = vld [vmem:[#allocation0 + $0x8] sm:$0xf]  ;;  %170 = vst [vmem:[%s240_s1 + $0x8] sm:$0xf] %v142_v34  ;;  %135 = vst [vmem:[%s240_s1] sm:$0xf] %v133_v35 }
  0x92   :  { %169 = vst [vmem:[%s240_s1 + $0x4] sm:$0xf] %v137_v36 }

// kernel: _lambda_.1
= control target key start
LH: loop header
LB: loop body
LE: loop exit
PB: predicated region body
PF: predicated region fallthrough
CT: control target
= control target key end

     0   :  { %7 = vsyncpa [#allocation3], 0  ;;  %s303_s0 = inlined_call_operand.hbm [shape: f32[8,128], index: 0, kind: input, shape index: {}]   ;;  %s304_s1 = inlined_call_operand.hbm [shape: f32[4,3,128], index: 1, kind: input, shape index: {}]   ;;  %s305_s2 = inlined_call_operand.hbm [shape: f32[8,128], index: 2, kind: output, shape index: {}]  }
   0x1   :  { %8 = vsyncpa [#allocation6], 0 }
   0x2   :  { %9 = vsyncpa [#allocation4], 0  ;;  %s238_s9 = smov [#allocation2]   ;;  %s239_s11 = smov [#allocation5]  }
   0x3   :  { %s16_s10 = sshll.u32 %s238_s9, 4  ;;  %s25_s12 = sshll.u32 %s239_s11, 4  ;;  %s17_s10 = int_to_ptr.vmem [resolvable:$true] %s16_s10  ;;  %s258_s12 = int_to_ptr.vmem [resolvable:$true] %s25_s12 }
   0x4   :  { %s166_s15 = scalar_lea.hbm %s303_s0, 128 }
   0x5   :  { %p167_p0 = scmp.ne.s32.totalorder %s303_s0, %s166_s15  ;;  %p170_p1 = scmp.lt.u32.totalorder %s166_s15, %s303_s0 }
   0x7   :  { %p172_p2 = pnand %p170_p1, %p167_p0 }
   0x9   :  { %175 = shalt.err (!%p172_p2)
}
   0xa   :  { %s176_s20 = scalar_lea.vmem %s17_s10, 128  ;;  %p181_p4 = scmp.lt.s32.totalorder %s17_s10, %s17_s10 }
   0xb   :  { %p177_p3 = scmp.ne.s32.totalorder %s17_s10, %s176_s20  ;;  %p182_p5 = scmp.lt.s32.totalorder %s176_s20, %s176_s20 }
   0xd   :  { %p183_p6 = por %p182_p5, %p181_p4 }
   0xf   :  { %p184_p7 = pnand %p183_p6, %p177_p3 }
  0x11   :  { %187 = shalt.err (!%p184_p7)
}
  0x12   :  { %19 = dma.hbm_to_vmem [thread:$0]  %s303_s0, 128, %s17_s10, [#allocation3]  }
  0x13   :  { %s188_s25 = scalar_lea.hbm %s304_s1, 256 }
  0x14   :  { %p189_p8 = scmp.ne.s32.totalorder %s304_s1, %s188_s25  ;;  %p192_p9 = scmp.lt.u32.totalorder %s188_s25, %s304_s1 }
  0x16   :  { %p194_p10 = pnand %p192_p9, %p189_p8 }
  0x18   :  { %197 = shalt.err (!%p194_p10)
}
  0x19   :  { %s198_s30 = scalar_lea.vmem %s258_s12, 256  ;;  %p203_p12 = scmp.lt.s32.totalorder %s258_s12, %s258_s12 }
  0x1a   :  { %p199_p11 = scmp.ne.s32.totalorder %s258_s12, %s198_s30  ;;  %p204_p13 = scmp.lt.s32.totalorder %s198_s30, %s198_s30 }
  0x1c   :  { %p205_p0 = por %p204_p13, %p203_p12 }
  0x1e   :  { %p206_p1 = pnand %p205_p0, %p199_p11 }
  0x20   :  { %209 = shalt.err (!%p206_p1)
}
  0x21   :  { %s240_s0 = smov 64   ;;  %s241_s3 = smov 4  }
  0x22   :  { %31 = dma.hbm_to_vmem [thread:$0]  %s304_s1, 256, %s258_s12, [#allocation6], %s240_s0, %s240_s0, %s241_s3  }
  0x23   :  { %232 = dma.done.wait [#allocation3], 128  }
  0x24   :  { %233 = vsyncadd [#allocation3], 4294967168 }
  0x25   :  { %234 = dma.done.wait [#allocation6], 256  }
  0x26   :  { %235 = vsyncadd [#allocation6], 4294967040  ;;  %v40_v0 = vlaneseq  ;;  %v38_v4 = vld [vmem:[#allocation2] sm:$0xff]  ;;  %v39_v5 = vld [vmem:[#allocation5] sm:$0x7]  ;;  %s242_s1 = smov [#allocation7]  }
  0x27   :  { %v57_v7 = vld [vmem:[#allocation5 + $0x4] sm:$0x7]  ;;  %v76_v10 = vld [vmem:[#allocation5 + $0x8] sm:$0x7]  ;;  %v95_v11 = vld [vmem:[#allocation5 + $0xc] sm:$0x7] }
  0x28   :  { %v41_v1 = vshrl.u32 %v40_v0, 7  ;;  %s141_s6 = sshll.u32 %s242_s1, 4  ;;  %s142_s6 = int_to_ptr.vmem [resolvable:$true] %s141_s6 }
  0x29   :  { %s210_s7 = scalar_lea.vmem %s142_s6, 128  ;;  %p215_p3 = scmp.lt.s32.totalorder %s142_s6, %s142_s6 }
  0x2a   :  { %v42_v2 = vsub.s32 0, %v41_v1  ;;  %v48_v3 = vsub.s32 1, %v41_v1  ;;  %v53_v6 = vsub.s32 2, %v41_v1  ;;  %p211_p2 = scmp.ne.s32.totalorder %s142_s6, %s210_s7  ;;  %p216_p4 = scmp.lt.s32.totalorder %s210_s7, %s210_s7 }
  0x2c   :  { %v43_v8 = vrot.slane %v39_v5, %v42_v2  ;;  %v61_v9 = vrot.slane %v57_v7, %v42_v2  ;;  %v49_v12 = vrot.slane %v39_v5, %v48_v3  ;;  %v80_v13 = vrot.slane %v76_v10, %v42_v2  ;;  %p217_p5 = por %p216_p4, %p215_p3 }
  0x2d   :  { %v67_v16 = vrot.slane %v57_v7, %v48_v3  ;;  %v99_v17 = vrot.slane %v95_v11, %v42_v2  ;;  %v54_v18 = vrot.slane %v39_v5, %v53_v6  ;;  %v72_v19 = vrot.slane %v57_v7, %v53_v6 }
  0x2e   :  { %v44_v14 = vsub.f32 %v38_v4, %v43_v8  ;;  %v62_v15 = vsub.f32 %v38_v4, %v61_v9  ;;  %v81_v20 = vsub.f32 %v38_v4, %v80_v13  ;;  %v86_v21 = vrot.slane %v76_v10, %v48_v3  ;;  %p218_p6 = pnand %p217_p5, %p211_p2 }
  0x2f   :  { %v100_v24 = vsub.f32 %v38_v4, %v99_v17  ;;  %v105_v25 = vrot.slane %v95_v11, %v48_v3  ;;  %v91_v27 = vrot.slane %v76_v10, %v53_v6  ;;  %v110_v31 = vrot.slane %v95_v11, %v53_v6 }
  0x30   :  { %v45_v22 = vmul.f32 %v44_v14, %v44_v14  ;;  %v63_v23 = vmul.f32 %v62_v15, %v62_v15  ;;  %v82_v26 = vmul.f32 %v81_v20, %v81_v20 }
  0x31   :  { %v101_v30 = vmul.f32 %v100_v24, %v100_v24 }
  0x32   :  { %v50_v28 = vmul.f32 %v49_v12, %v45_v22  ;;  %v68_v29 = vmul.f32 %v67_v16, %v63_v23  ;;  %v87_v32 = vmul.f32 %v86_v21, %v82_v26 }
  0x33   :  { %v106_v35 = vmul.f32 %v105_v25, %v101_v30 }
  0x34   :  { %v55_v33 = vsub.f32 %v54_v18, %v50_v28  ;;  %v73_v34 = vsub.f32 %v72_v19, %v68_v29  ;;  %v92_v36 = vsub.f32 %v91_v27, %v87_v32 }
  0x35   :  { %v111_v38 = vsub.f32 %v110_v31, %v106_v35 }
  0x36   :  { %v74_v37 = vmax.f32 %v55_v33, %v73_v34 }
  0x38   :  { %v93_v39 = vmax.f32 %v74_v37, %v92_v36 }
  0x3a   :  { %v112_v40 = vmax.f32 %v93_v39, %v111_v38 }
  0x3c   :  { %vm113_vm0 = vcmp.eq.f32.partialorder %v112_v40, -inf }
  0x3d   :  { %v114_v41 = vsel %vm113_vm0, 0.0, %v112_v40 }
  0x3e   :  { %v115_v42 = vsub.f32 %v55_v33, %v114_v41  ;;  %v118_v43 = vsub.f32 %v73_v34, %v114_v41  ;;  %v122_v44 = vsub.f32 %v92_v36, %v114_v41  ;;  %v126_v45 = vsub.f32 %v111_v38, %v114_v41 }
  0x40   :  { %v116_v46 = vmul.f32 1.442695, %v115_v42  ;;  %v119_v47 = vmul.f32 1.442695, %v118_v43  ;;  %v123_v48 = vmul.f32 1.442695, %v122_v44 }
  0x41   :  { %v127_v49 = vmul.f32 1.442695, %v126_v45 }
  0x42   :  { %156 = vpow2.f32 %v116_v46 }
  0x43   :  { %158 = vpow2.f32 %v119_v47 }
  0x44   :  { %160 = vpow2.f32 %v123_v48 }
  0x45   :  { %162 = vpow2.f32 %v127_v49 }
  0x4c   :  { %v157_v50 = vpop.eup %156 }
  0x4d   :  { %v159_v51 = vpop.eup %158 }
  0x4e   :  { %v161_v52 = vpop.eup %160  ;;  %v121_v53 = vadd.f32 %v159_v51, %v157_v50 }
  0x4f   :  { %v163_v54 = vpop.eup %162 }
  0x50   :  { %v125_v55 = vadd.f32 %v161_v52, %v121_v53 }
  0x52   :  { %v129_v56 = vadd.f32 %v163_v54, %v125_v55 }
  0x54   :  { %164 = vlog2.f32 %v129_v56 }
  0x5e   :  { %v165_v57 = vpop.eup %164 }
  0x5f   :  { %v131_v58 = vmul.f32 0.6931472, %v165_v57 }
  0x61   :  { %v132_v59 = vadd.f32 %v131_v58, %v114_v41 }
  0x63   :  { %v133_v60 = vsel %vm113_vm0, %v112_v40, %v132_v59 }
  0x64   :  { %134 = vst [vmem:[#allocation7] sm:$0xff] %v133_v60 }
  0x65   :  { %221 = shalt.err (!%p218_p6)
}
  0x66   :  { %s222_s10 = scalar_lea.hbm %s305_s2, 128 }
  0x67   :  { %p223_p7 = scmp.ne.s32.totalorder %s305_s2, %s222_s10  ;;  %p226_p8 = scmp.lt.u32.totalorder %s222_s10, %s305_s2 }
  0x69   :  { %p228_p9 = pnand %p226_p8, %p223_p7 }
  0x6b   :  { %231 = shalt.err (!%p228_p9)
}
  0x6c   :  { %144 = dma.vmem_to_hbm [thread:$0]  %s142_s6, 128, %s305_s2, [#allocation4]  }
  0x6d   :  { %236 = dma.done.wait [#allocation4], 128  }
  0x6e   :  { %237 = vsyncadd [#allocation4], 4294967168 }
  0x6f   :  { %148 = vsyncpa [#allocation3], 1 }
  0x70   :  { %149 = vsyncpa [#allocation6], 1 }
  0x71   :  { %150 = vsyncpa [#allocation4], 1 }

</bundles_post_ra>
